<compile_context>
chip_gen: v7x
topology: tpu7x:2x2x1
jax: 0.10.0
libtpu: 0.0.40
codegen_flags: <defaults>
</compile_context>

<pallas_src>
import jax
import jax.numpy as jnp
from jax.experimental import pallas as pl
from jax.experimental.pallas import tpu as pltpu

NEG_SLOPE = 0.01   # nn.LeakyReLU() default negative_slope
LANE = 128         # TPU lane width
MAX_TB = 512       # batch-tile (lane) size; mem-bound sweet spot per review


# ---------------------------------------------------------------------------
# Kernel factory: fused Linear -> LeakyReLU -> Linear -> Sigmoid on one
# batch tile, with batch on the lane axis.
#   x_ref : (E, tb)      activations, lane-dense in batch
#   p_ref : (Rp, 128)    packed params (W1, b1, W2, b2), VMEM-resident
#   o_ref : (O, tb)      outputs, lane-dense in batch
# ---------------------------------------------------------------------------
def make_decoder_dv_kernel(E, H, O, w2_row):
    def kernel(x_ref, p_ref, o_ref):
        xT = x_ref[...]                                   # (E, tb)

        # Static, sublane-aligned views into the packed parameter blob.
        w1 = p_ref[0:H, 0:E]                              # (H, E)
        b1 = p_ref[0:H, E:E + 1]                          # (H, 1)
        w2 = p_ref[w2_row:w2_row + O, 0:H]                # (O, H)
        b2 = p_ref[w2_row:w2_row + O, H:H + 1]            # (O, 1)

        # Layer 1: Linear(E, H) + LeakyReLU  (MXU dot, VPU select)
        h = jnp.dot(w1, xT, preferred_element_type=jnp.float32) + b1
        h = jnp.where(h > 0, h, NEG_SLOPE * h)

        # Layer 2: Linear(H, O) + Sigmoid    (MXU dot, EUP exp)
        y = jnp.dot(w2, h, preferred_element_type=jnp.float32) + b2
        o_ref[...] = jax.nn.sigmoid(y)

    return kernel


# ---------------------------------------------------------------------------
# Host-side parameter construction / packing (plain JAX glue).
# ---------------------------------------------------------------------------
def make_params(key, embedding_dim, hidden_dim, output_dim):
    """PyTorch-style init; returns (packed_blob, w2_row_offset, torch_layout)."""
    E, H, O = embedding_dim, hidden_dim, output_dim
    k1, k2, k3, k4 = jax.random.split(key, 4)

    def u(k, shape, fan_in):
        bound = 1.0 / jnp.sqrt(jnp.float32(fan_in))
        return jax.random.uniform(k, shape, jnp.float32, -bound, bound)

    w1 = u(k1, (H, E), E)      # Linear(E, H): PyTorch (out, in)
    b1 = u(k2, (H,), E)
    w2 = u(k3, (O, H), H)      # Linear(H, O)
    b2 = u(k4, (O,), H)

    # Sublane-aligned blob layout (batch-on-lanes compute layout):
    #   rows [0, H)            cols [0, E) : W1          cols [E]     : b1
    #   rows [r2, r2 + O)      cols [0, H) : W2          cols [H]     : b2
    # where r2 is the next multiple of 8 above H; total rows padded to mult of 8,
    # cols padded to one full 128-lane tile.
    r2 = ((H + 7) // 8) * 8
    rows = ((r2 + O + 7) // 8) * 8
    cols = LANE
    assert cols >= max(E + 1, H + 1)

    blob = jnp.zeros((rows, cols), jnp.float32)
    blob = blob.at[0:H, 0:E].set(w1)
    blob = blob.at[0:H, E].set(b1)
    blob = blob.at[r2:r2 + O, 0:H].set(w2)
    blob = blob.at[r2:r2 + O, H].set(b2)

    torch_layout = dict(w1=w1, b1=b1, w2=w2, b2=b2)
    return blob, r2, torch_layout


# ---------------------------------------------------------------------------
# Wrapper around pallas_call.  Keeps the PyTorch (B, E) -> (B, O) interface;
# the transposes / padding are wrapper-side layout plumbing.
# ---------------------------------------------------------------------------
def decoder_dv_forward(x, packed_params, w2_row, hidden_dim, output_dim):
    """x: (B, E) f32 -> (B, O) f32."""
    B, E = x.shape
    H, O = hidden_dim, output_dim
    p_rows, p_cols = packed_params.shape

    # Lane (batch) tile: multiple of 128, capped at MAX_TB; pad B up to a tile
    # multiple so the grid covers every row (no silent truncation).
    tb = min(MAX_TB, pl.cdiv(B, LANE) * LANE)
    b_pad = pl.cdiv(B, tb) * tb
    grid = (b_pad // tb,)

    xT = x.T                                   # (E, B)
    if b_pad != B:
        xT = jnp.pad(xT, ((0, 0), (0, b_pad - B)))

    kernel = make_decoder_dv_kernel(E, H, O, w2_row)

    yT = pl.pallas_call(
        kernel,
        out_shape=jax.ShapeDtypeStruct((O, b_pad), jnp.float32),
        grid_spec=pltpu.PrefetchScalarGridSpec(
            num_scalar_prefetch=0,
            grid=grid,
            in_specs=[
                pl.BlockSpec((E, tb), lambda i: (0, i)),          # x tile (lane-dense)
                pl.BlockSpec((p_rows, p_cols), lambda i: (0, 0)),  # resident params
            ],
            out_specs=pl.BlockSpec((O, tb), lambda i: (0, i)),     # lane-dense store
        ),
        compiler_params=pltpu.CompilerParams(
            dimension_semantics=("parallel",)),                    # megacore on v7x
    )(xT, packed_params)

    return yT[:, :B].T                          # (B, O)


# ---------------------------------------------------------------------------
# Pure-JAX reference of the PyTorch forward (sanity check).
# ---------------------------------------------------------------------------
def decoder_dv_reference(x, tp):
    h = x @ tp["w1"].T + tp["b1"]
    h = jnp.where(h > 0, h, NEG_SLOPE * h)
    y = h @ tp["w2"].T + tp["b2"]
    return jax.nn.sigmoid(y)


if __name__ == "__main__":
    EMBED, HIDDEN, OUTPUT, BATCH = 7, 14, 28, 2   # DecoderDv defaults

    key = jax.random.PRNGKey(0)
    k_x, k_p = jax.random.split(key, 2)
    x = jax.random.normal(k_x, (BATCH, EMBED), jnp.float32)
    packed, w2_row, torch_params = make_params(k_p, EMBED, HIDDEN, OUTPUT)

    out = decoder_dv_forward(x, packed, w2_row, HIDDEN, OUTPUT)
    jax.block_until_ready(out)

    ref = decoder_dv_reference(x, torch_params)
    assert out.shape == (BATCH, OUTPUT)
    assert jnp.allclose(out, ref, atol=1e-5), "output mismatch vs reference"

    print("KERNEL_OK")
</pallas_src>

<mosaic_0001>
module attributes {stable_mosaic.version = 11 : i64} {
  func.func @kernel(%arg0: i32, %arg1: memref<7x128xf32, #tpu.memory_space<vmem>>, %arg2: memref<48x128xf32, #tpu.memory_space<vmem>>, %arg3: memref<28x128xf32, #tpu.memory_space<vmem>>) attributes {dimension_semantics = [#tpu.dimension_semantics<parallel>], iteration_bounds = array<i64: 1>, scalar_prefetch = 0 : i64, scratch_operands = 0 : i64, tpu.core_type = #tpu.core_type<tc>, window_params = [{transform_indices = @transform_0, window_bounds = array<i64: 7, 128>}, {pipeline_mode = #tpu.pipeline_mode<synchronous>, transform_indices = @transform_1, window_bounds = array<i64: 48, 128>}, {transform_indices = @transform_2, window_bounds = array<i64: 28, 128>}]} {
    %c0 = arith.constant 0 : index
    %c0_0 = arith.constant 0 : index
    %0 = vector.load %arg1[%c0, %c0_0] : memref<7x128xf32, #tpu.memory_space<vmem>>, vector<7x128xf32>
    %c0_1 = arith.constant 0 : index
    %c0_2 = arith.constant 0 : index
    %1 = vector.load %arg2[%c0_1, %c0_2] : memref<48x128xf32, #tpu.memory_space<vmem>>, vector<14x7xf32>
    %c0_3 = arith.constant 0 : index
    %c7 = arith.constant 7 : index
    %2 = vector.load %arg2[%c0_3, %c7] : memref<48x128xf32, #tpu.memory_space<vmem>>, vector<14x1xf32>
    %c16 = arith.constant 16 : index
    %c0_4 = arith.constant 0 : index
    %3 = vector.load %arg2[%c16, %c0_4] : memref<48x128xf32, #tpu.memory_space<vmem>>, vector<28x14xf32>
    %c16_5 = arith.constant 16 : index
    %c14 = arith.constant 14 : index
    %4 = vector.load %arg2[%c16_5, %c14] : memref<48x128xf32, #tpu.memory_space<vmem>>, vector<28x1xf32>
    %cst = arith.constant dense<0.000000e+00> : vector<14x128xf32>
    %5 = tpu.matmul %1, %0, %cst {dimension_numbers = #tpu.dot_dimension_numbers<[1], [0], [0], [1], [0, 0, 1, 1], [], []>} : vector<14x7xf32>, vector<7x128xf32>, vector<14x128xf32> -> vector<14x128xf32>
    %6 = vector.broadcast %2 : vector<14x1xf32> to vector<14x128xf32>
    %7 = arith.addf %5, %6 : vector<14x128xf32>
    %cst_6 = arith.constant 0.000000e+00 : f32
    %8 = vector.broadcast %cst_6 : f32 to vector<14x128xf32>
    %9 = arith.cmpf ogt, %7, %8 : vector<14x128xf32>
    %cst_7 = arith.constant 0.00999999977 : f32
    %10 = vector.broadcast %cst_7 : f32 to vector<14x128xf32>
    %11 = arith.mulf %10, %7 : vector<14x128xf32>
    %12 = arith.select %9, %7, %11 : vector<14x128xi1>, vector<14x128xf32>
    %cst_8 = arith.constant dense<0.000000e+00> : vector<28x128xf32>
    %13 = tpu.matmul %3, %12, %cst_8 {dimension_numbers = #tpu.dot_dimension_numbers<[1], [0], [0], [1], [0, 0, 1, 1], [], []>} : vector<28x14xf32>, vector<14x128xf32>, vector<28x128xf32> -> vector<28x128xf32>
    %14 = vector.broadcast %4 : vector<28x1xf32> to vector<28x128xf32>
    %15 = arith.addf %13, %14 : vector<28x128xf32>
    %16 = arith.negf %15 : vector<28x128xf32>
    %17 = math.exp %16 : vector<28x128xf32>
    %cst_9 = arith.constant 1.000000e+00 : f32
    %18 = vector.broadcast %cst_9 : f32 to vector<28x128xf32>
    %19 = arith.addf %18, %17 : vector<28x128xf32>
    %20 = arith.divf %18, %19 : vector<28x128xf32>
    %c0_10 = arith.constant 0 : index
    %c0_11 = arith.constant 0 : index
    %21 = vector.load %arg3[%c0_10, %c0_11] : memref<28x128xf32, #tpu.memory_space<vmem>>, vector<28x128xf32>
    tpu.vector_store %arg3[%c0_10, %c0_11], %20 {strides = array<i32>} : memref<28x128xf32, #tpu.memory_space<vmem>>, vector<28x128xf32>,
    return
  }
  func.func @transform_0(%arg0: i32) -> (i32, i32) {
    %c0_i32 = arith.constant 0 : i32
    %c0_i32_0 = arith.constant 0 : i32
    return %c0_i32, %arg0 : i32, i32
  }
  func.func @transform_1(%arg0: i32) -> (i32, i32) {
    %c0_i32 = arith.constant 0 : i32
    %c0_i32_0 = arith.constant 0 : i32
    %c0_i32_1 = arith.constant 0 : i32
    return %c0_i32, %c0_i32_0 : i32, i32
  }
  func.func @transform_2(%arg0: i32) -> (i32, i32) {
    %c0_i32 = arith.constant 0 : i32
    %c0_i32_0 = arith.constant 0 : i32
    return %c0_i32, %arg0 : i32, i32
  }
}

</mosaic_0001>

<bundles_post_ra>
// kernel: tpu_custom_call.1
= control target key start
LH: loop header
LB: loop body
LE: loop exit
PB: predicated region body
PF: predicated region fallthrough
CT: control target
= control target key end

     0   :  { %7 = vsyncpa [#allocation3], 0  ;;  %s528_s0 = inlined_call_operand.hbm [shape: f32[7,128], index: 0, kind: input, shape index: {}]   ;;  %s529_s1 = inlined_call_operand.hbm [shape: f32[48,128], index: 1, kind: input, shape index: {}]   ;;  %s530_s2 = inlined_call_operand.hbm [shape: f32[28,128], index: 2, kind: output, shape index: {}]  }
   0x1   :  { %8 = vsyncpa [#allocation6], 0 }
   0x2   :  { %9 = vsyncpa [#allocation4], 0  ;;  %s452_s9 = smov [#allocation2]   ;;  %s453_s11 = smov [#allocation5]  }
   0x3   :  { %s16_s10 = sshll.u32 %s452_s9, 4  ;;  %s25_s12 = sshll.u32 %s453_s11, 4  ;;  %s17_s10 = int_to_ptr.vmem [resolvable:$true] %s16_s10  ;;  %s475_s12 = int_to_ptr.vmem [resolvable:$true] %s25_s12 }
   0x4   :  { %s380_s15 = scalar_lea.hbm %s528_s0, 128 }
   0x5   :  { %p381_p0 = scmp.ne.s32.totalorder %s528_s0, %s380_s15  ;;  %p384_p1 = scmp.lt.u32.totalorder %s380_s15, %s528_s0 }
   0x7   :  { %p386_p2 = pnand %p384_p1, %p381_p0 }
   0x9   :  { %389 = shalt.err (!%p386_p2)
}
   0xa   :  { %s390_s20 = scalar_lea.vmem %s17_s10, 128  ;;  %p395_p4 = scmp.lt.s32.totalorder %s17_s10, %s17_s10 }
   0xb   :  { %p391_p3 = scmp.ne.s32.totalorder %s17_s10, %s390_s20  ;;  %p396_p5 = scmp.lt.s32.totalorder %s390_s20, %s390_s20 }
   0xd   :  { %p397_p6 = por %p396_p5, %p395_p4 }
   0xf   :  { %p398_p7 = pnand %p397_p6, %p391_p3 }
  0x11   :  { %401 = shalt.err (!%p398_p7)
}
  0x12   :  { %19 = dma.hbm_to_vmem [thread:$0]  %s528_s0, 128, %s17_s10, [#allocation3]  }
  0x13   :  { %s402_s25 = scalar_lea.hbm %s529_s1, 768 }
  0x14   :  { %p403_p8 = scmp.ne.s32.totalorder %s529_s1, %s402_s25  ;;  %p406_p9 = scmp.lt.u32.totalorder %s402_s25, %s529_s1 }
  0x16   :  { %p408_p10 = pnand %p406_p9, %p403_p8 }
  0x18   :  { %411 = shalt.err (!%p408_p10)
}
  0x19   :  { %s412_s30 = scalar_lea.vmem %s475_s12, 768  ;;  %p417_p12 = scmp.lt.s32.totalorder %s475_s12, %s475_s12 }
  0x1a   :  { %p413_p11 = scmp.ne.s32.totalorder %s475_s12, %s412_s30  ;;  %p418_p13 = scmp.lt.s32.totalorder %s412_s30, %s412_s30 }
  0x1c   :  { %p419_p0 = por %p418_p13, %p417_p12 }
  0x1e   :  { %p420_p1 = pnand %p419_p0, %p413_p11 }
  0x20   :  { %423 = shalt.err (!%p420_p1)
}
  0x21   :  { %s454_s0 = smov 128   ;;  %s455_s3 = smov 8  }
  0x22   :  { %31 = dma.hbm_to_vmem [thread:$0]  %s529_s1, 768, %s475_s12, [#allocation6], %s454_s0, %s454_s0, %s455_s3  }
  0x23   :  { %446 = dma.done.wait [#allocation3], 128  }
  0x24   :  { %447 = vsyncadd [#allocation3], 4294967168 }
  0x25   :  { %448 = dma.done.wait [#allocation6], 768  }
  0x26   :  { %449 = vsyncadd [#allocation6], 4294966528  ;;  %v456_v0 = vmov 7   ;;  %vm60_vm0 = vcmask 1046528   ;;  %vm55_vm1 = vcmask 56320   ;;  %v39_v2 = vld [vmem:[#allocation5] sm:$0xff] }
  0x27   :  { %361 = vset.pattern.permute.xlu0 %v456_v0  ;;  %v38_v1 = vld [vmem:[#allocation2] sm:$0x7f]  ;;  %v40_v3 = vld [vmem:[#allocation5 + $0x8] sm:$0x3f]  ;;  %332 = vmatprep.mubr.msk.f32.mxu0 %vm55_vm1, %v39_v2  ;;  %v41_v4 = vld [vmem:[#allocation5 + $0x10] sm:$0xff]  ;;  %vm165_vm2 = vcmask 113664  }
  0x28   :  { %330 = vmatprep.subr.msk.mxu0 %vm60_vm0, %v38_v1  ;;  %47 = vperm.xlu0 %361, %v39_v2   ;;  %v43_v5 = vld [vmem:[#allocation5 + $0x20] sm:$0xff]  ;;  %v457_v6 = vmov 14   ;;  %v42_v7 = vld [vmem:[#allocation5 + $0x18] sm:$0xff]  ;;  %v44_v8 = vld [vmem:[#allocation5 + $0x28] sm:$0xf]  ;;  %vm174_vm4 = vcmask 1045504  }
  0x29   :  { %331 = vmatpush3.msk.msra.mxu0 %vm60_vm0, %v38_v1  ;;  %342 = vmatprep.mubr.msk.f32.mxu1 %vm165_vm2, %v43_v5  ;;  %vm458_vm6 = vmmov 1   ;;  %s459_s1 = smov [#allocation7]  }
  0x2a   :  { %333 = vmatmul.mubr.msk.f32.vlgmr.msra.gmra.mrb[0].mxu0 %vm55_vm1, %v40_v3  ;;  %362 = vset.pattern.permute.xlu1 %v457_v6  ;;  %vm346_vm7 = vmpackc.low %vm174_vm4, %vm458_vm6  ;;  %s296_s6 = sshll.u32 %s459_s1, 4  ;;  %s297_s6 = int_to_ptr.vmem [resolvable:$true] %s296_s6 }
  0x2b   :  { %339 = vmatprep.mubr.msk.f32.mxu0 %vm165_vm2, %v41_v4  ;;  %147 = vperm.xlu1 %362, %v41_v4   ;;  %s424_s7 = scalar_lea.vmem %s297_s6, 512  ;;  %p429_p3 = scmp.lt.s32.totalorder %s297_s6, %s297_s6 }
  0x2c   :  { %52 = vperm.xlu0 %361, %v40_v3   ;;  %p425_p2 = scmp.ne.s32.totalorder %s297_s6, %s424_s7  ;;  %p430_p4 = scmp.lt.s32.totalorder %s424_s7, %s424_s7 }
  0x2e   :  { %p431_p5 = por %p430_p4, %p429_p3 }
  0x2f   :  { %152 = vperm.xlu1 %362, %v42_v7  }
  0x30   :  { %363 = vset.pattern.permute.xlu0 %v457_v6  ;;  %p432_p6 = pnand %p431_p5, %p425_p2 }
  0x31   :  { %157 = vperm.xlu0 %363, %v43_v5  }
  0x33   :  { %162 = vperm.xlu1 %362, %v44_v8  }
  0xa7   :  { %v48_v9 = vpop.permute.xlu0 %47 }
  0xaa   :  { %v148_v20 = vpop.permute.xlu1 %147 }
  0xab   :  { %v53_v10 = vpop.permute.xlu0 %52 }
  0xae   :  { %v153_v21 = vpop.permute.xlu1 %152 }
  0xb0   :  { %v158_v23 = vpop.permute.xlu0 %157 }
  0xb2   :  { %v163_v22 = vpop.permute.xlu1 %162 }
  0xfd   :  { %v334_v11 = vpop.f32.mrb[0].mxu0 }
  0xfe   :  { %v136_v12 = vadd.f32 %v334_v11, %v53_v10  ;;  %v130_v13 = vpop.f32.mrb[1].mxu0 }
  0xff   :  { %v131_v14 = vadd.f32 %v130_v13, %v48_v9 }
 0x100   :  { %vm140_vm3 = vcmp.gt.f32.partialorder %v136_v12, 0.0  ;;  %v142_v15 = vmul.f32 0.01, %v136_v12 }
 0x101   :  { %vm139_vm5 = vcmp.gt.f32.partialorder %v131_v14, 0.0  ;;  %v141_v16 = vmul.f32 0.01, %v131_v14 }
 0x102   :  { %v144_v17 = vsel %vm140_vm3, %v136_v12, %v142_v15 }
 0x103   :  { %v143_v18 = vsel %vm139_vm5, %v131_v14, %v141_v16 }
 0x104   :  { %v345_v19 = vpack.c.bf16 %v144_v17, %v143_v18 }
 0x106   :  { %347 = vmatprep.subr.msk.bf16.mxu0 %vm346_vm7, %v345_v19  ;;  %351 = vmatprep.subr.msk.bf16.mxu1 %vm346_vm7, %v345_v19 }
 0x107   :  { %350 = vmatpush3.bf16.msk.msra.mxu0 %vm346_vm7, %v345_v19  ;;  %352 = vmatpush3.bf16.msk.msra.mxu1 %vm346_vm7, %v345_v19 }
 0x10a   :  { %340 = vmatmul.mubr.msk.f32.vlgmr.msra.gmra.mrb[2].mxu0 %vm165_vm2, %v42_v7  ;;  %343 = vmatmul.mubr.msk.f32.vlgmr.msra.gmra.mrb[0].mxu1 %vm165_vm2, %v44_v8 }
 0x1dd   :  { %v341_v24 = vpop.f32.mrb[2].mxu0  ;;  %v344_v25 = vpop.f32.mrb[0].mxu1 }
 0x1de   :  { %v250_v26 = vadd.f32 %v341_v24, %v153_v21  ;;  %v260_v27 = vadd.f32 %v344_v25, %v163_v22  ;;  %v244_v28 = vpop.f32.mrb[3].mxu0  ;;  %v254_v29 = vpop.f32.mrb[1].mxu1 }
 0x1df   :  { %v245_v30 = vadd.f32 %v244_v28, %v148_v20  ;;  %v255_v31 = vadd.f32 %v254_v29, %v158_v23 }
 0x1e0   :  { %v318_v32 = vmul.f32 -1.442695, %v250_v26  ;;  %v320_v33 = vmul.f32 -1.442695, %v260_v27 }
 0x1e1   :  { %v317_v34 = vmul.f32 -1.442695, %v245_v30  ;;  %v319_v35 = vmul.f32 -1.442695, %v255_v31 }
 0x1e2   :  { %364 = vpow2.f32 %v318_v32 }
 0x1e3   :  { %366 = vpow2.f32 %v320_v33 }
 0x1e4   :  { %368 = vpow2.f32 %v317_v34 }
 0x1e5   :  { %370 = vpow2.f32 %v319_v35 }
 0x1ec   :  { %v365_v36 = vpop.eup %364 }
 0x1ed   :  { %v367_v37 = vpop.eup %366  ;;  %v276_v38 = vadd.f32 1.0, %v365_v36 }
 0x1ee   :  { %v369_v39 = vpop.eup %368  ;;  %v278_v40 = vadd.f32 1.0, %v367_v37 }
 0x1ef   :  { %v371_v41 = vpop.eup %370  ;;  %372 = vrcp.f32 %v276_v38  ;;  %v275_v42 = vadd.f32 1.0, %v369_v39 }
 0x1f0   :  { %374 = vrcp.f32 %v278_v40  ;;  %v277_v43 = vadd.f32 1.0, %v371_v41 }
 0x1f1   :  { %376 = vrcp.f32 %v275_v42 }
 0x1f2   :  { %378 = vrcp.f32 %v277_v43 }
 0x1f9   :  { %v373_v44 = vpop.eup %372 }
 0x1fa   :  { %v375_v45 = vpop.eup %374  ;;  %288 = vst [vmem:[#allocation7 + $0x8] sm:$0xff] %v373_v44 }
 0x1fb   :  { %v377_v46 = vpop.eup %376  ;;  %290 = vst [vmem:[#allocation7 + $0x18] sm:$0xf] %v375_v45 }
 0x1fc   :  { %v379_v47 = vpop.eup %378  ;;  %287 = vst [vmem:[#allocation7] sm:$0xff] %v377_v46 }
 0x1fd   :  { %289 = vst [vmem:[#allocation7 + $0x10] sm:$0xff] %v379_v47 }
 0x1fe   :  { %435 = shalt.err (!%p432_p6)
}
 0x1ff   :  { %s436_s10 = scalar_lea.hbm %s530_s2, 512 }
 0x200   :  { %p437_p7 = scmp.ne.s32.totalorder %s530_s2, %s436_s10  ;;  %p440_p8 = scmp.lt.u32.totalorder %s436_s10, %s530_s2 }
 0x202   :  { %p442_p9 = pnand %p440_p8, %p437_p7 }
 0x204   :  { %445 = shalt.err (!%p442_p9)
}
 0x205   :  { %302 = dma.vmem_to_hbm [thread:$0]  %s297_s6, 512, %s530_s2, [#allocation4], %s454_s0, %s454_s0, %s455_s3  }
 0x206   :  { %450 = dma.done.wait [#allocation4], 512  }
 0x207   :  { %451 = vsyncadd [#allocation4], 4294966784 }
 0x208   :  { %306 = vsyncpa [#allocation3], 1 }
 0x209   :  { %307 = vsyncpa [#allocation6], 1 }
 0x20a   :  { %308 = vsyncpa [#allocation4], 1 }

</bundles_post_ra>
